<compile_context>
chip_gen: v7x
topology: tpu7x:2x2x1
jax: 0.10.0
libtpu: 0.0.40
codegen_flags: <defaults>
</compile_context>

<pallas_src>
import math

import jax
import jax.numpy as jnp
from jax.experimental import pallas as pl
from jax.experimental.pallas import tpu as pltpu


def _watermark_kernel(x_ref, m_ref, o_ref):
    """out = x * mask; the (unit, tc) mask broadcasts over tb // unit groups."""
    tb, tc = x_ref.shape
    u = m_ref.shape[0]
    if tb == u:
        o_ref[...] = x_ref[...] * m_ref[...]
    else:
        # tb and u are both multiples of the sublane pack, so this reshape is a
        # pure re-grouping of whole (8, 128) tiles (no relayout).
        x = x_ref[...].reshape(tb // u, u, tc)
        o_ref[...] = (x * m_ref[...]).reshape(tb, tc)


def _vmem_budgets():
    """(block_budget_bytes, vmem_limit_bytes) derived from this chip's VMEM."""
    phys = None
    try:
        phys = getattr(pltpu.get_tpu_info(), "vmem_capacity_bytes", None)
    except Exception:
        phys = None
    if not phys:
        phys = 64 << 20  # assume the smallest generation (v7x) if query fails
    block_budget = min(3 * phys // 8, 48 << 20)    # v7x: 24 MiB, v5e/v6e: 48 MiB
    vmem_limit = min(2 * block_budget, phys // 2)  # v7x: 32 MiB, v5e/v6e: 64 MiB
    return block_budget, vmem_limit


def _choose_tiles(rows, cols, period, itemsize, budget_bytes):
    """Pick (tb, tc, unit): row/col tile sizes and the mask replication unit."""
    pack = max(8, 32 // itemsize)                    # 8 f32, 16 bf16, 32 int8/fp8
    unit = period * pack // math.gcd(period, pack)   # lcm(period, pack)
    if unit > rows:
        unit = rows                                  # tiny input: one full-row block

    # Column tile: full cols if a unit-row block fits the budget, otherwise the
    # largest multiple of 128 that does (partial edge tile handled by cdiv).
    per_col_bytes = (4 + 2) * unit * itemsize        # 2x x + 2x out + 2x mask bufs
    max_tc = max(128, budget_bytes // per_col_bytes)
    tc = cols if cols <= max_tc else max(128, (max_tc // 128) * 128)

    # Row tile: as many whole units as the remaining budget allows, never more
    # than the largest whole-unit row count, and capped so the row grid has at
    # least 2 steps when possible (megacore sharding on v7x).
    avail = budget_bytes - 2 * unit * tc * itemsize
    tb = max(unit, (avail // (4 * tc * itemsize)) // unit * unit)
    tb = min(tb, max(unit, (rows // unit) * unit))
    if rows >= 2 * unit:
        half = -(-rows // 2)                         # cdiv(rows, 2)
        tb = min(tb, -(-half // unit) * unit)        # rounded up to a unit
    return tb, tc, unit


def watermark_forward(x, locations, *, donate_x=False):
    """x: (..., C, H, W) float array. locations: (N, 3) int array [c, h, w]."""
    *lead, C, H, W = x.shape
    B = 1
    for d in lead:
        B *= d
    hw = H * W
    itemsize = jnp.dtype(x.dtype).itemsize

    # Single scatter builds the per-image mask; the kernel never recomputes it.
    flat = (
        locations[:, 0].astype(jnp.int32) * hw
        + locations[:, 1].astype(jnp.int32) * W
        + locations[:, 2].astype(jnp.int32)
    )
    mask_flat = jnp.ones((C * hw,), dtype=x.dtype).at[flat].set(0)

    # Layout: prefer (B*C, H*W) rows so the mask has period C and stays tiny.
    # If H*W is not lane-dense (multiple of 128) but C*H*W is, fold channels
    # into the lane dim instead (period 1) to keep vst unmasked.
    if hw % 128 == 0 or (C * hw) % 128 != 0:
        rows, cols, period = B * C, hw, C
        mask_p = mask_flat.reshape(C, hw)
    else:
        rows, cols, period = B, C * hw, 1
        mask_p = mask_flat.reshape(1, C * hw)
    # TODO(synk): for shapes where neither H*W nor C*H*W is a multiple of 128,
    # lane-edge vregs still use masked stores; a padded-copy layout could fix it.

    budget, vmem_limit = _vmem_budgets()
    tb, tc, unit = _choose_tiles(rows, cols, period, itemsize, budget)

    # Replicate the period-`period` mask only up to one sublane-packed unit.
    mask_unit = jnp.tile(mask_p, (unit // period, 1)) if unit != period else mask_p

    x2d = x.reshape(rows, cols)
    # Column axis OUTER: the mask block index depends only on it, so the mask
    # is re-fetched once per column stripe, not once per step.
    grid = (pl.cdiv(cols, tc), pl.cdiv(rows, tb))

    out2d = pl.pallas_call(
        _watermark_kernel,
        out_shape=jax.ShapeDtypeStruct((rows, cols), x.dtype),
        grid_spec=pltpu.PrefetchScalarGridSpec(
            num_scalar_prefetch=0,
            grid=grid,
            in_specs=[
                pl.BlockSpec((tb, tc), lambda jc, ir: (ir, jc)),    # x tile
                pl.BlockSpec((unit, tc), lambda jc, ir: (0, jc)),   # tiny mask tile
            ],
            out_specs=pl.BlockSpec((tb, tc), lambda jc, ir: (ir, jc)),
        ),
        compiler_params=pltpu.CompilerParams(
            dimension_semantics=("parallel", "parallel"),  # megacore-shardable (v7x)
            vmem_limit_bytes=vmem_limit,
        ),
        # Reuse x's HBM buffer for the output when the caller donates x.
        input_output_aliases=({0: 0} if donate_x else {}),
    )(x2d, mask_unit)
    return out2d.reshape(x.shape)


def watermark_reference(x, locations):
    """Pure-JAX reference matching the PyTorch forward."""
    mask = jnp.ones_like(x)
    mask = mask.at[..., locations[:, 0], locations[:, 1], locations[:, 2]].set(0.0)
    return x * mask


if __name__ == "__main__":
    key = jax.random.PRNGKey(0)
    B, C, H, W = 2, 4, 16, 16
    N = 8  # number of masked locations

    k_x, k_loc = jax.random.split(key)
    x = jax.random.normal(k_x, (B, C, H, W), dtype=jnp.float32)

    # Deterministic "random" watermark locations (distinct flat indices).
    flat = jax.random.permutation(k_loc, C * H * W)[:N]
    locations = jnp.stack(
        [flat // (H * W), (flat // W) % H, flat % W], axis=-1
    ).astype(jnp.int32)

    ref = watermark_reference(x, locations)

    out = watermark_forward(x, locations)
    out = jax.block_until_ready(out)

    assert out.shape == (B, C, H, W)
    assert jnp.allclose(out, ref), "Pallas kernel disagrees with reference"

    print("KERNEL_OK")
</pallas_src>

<mosaic_0001>
module attributes {stable_mosaic.version = 11 : i64} {
  func.func @_watermark_kernel(%arg0: i32, %arg1: i32, %arg2: memref<8x256xf32, #tpu.memory_space<vmem>>, %arg3: memref<8x256xf32, #tpu.memory_space<vmem>>, %arg4: memref<8x256xf32, #tpu.memory_space<vmem>>) attributes {dimension_semantics = [#tpu.dimension_semantics<parallel>, #tpu.dimension_semantics<parallel>], iteration_bounds = array<i64: 1, 1>, scalar_prefetch = 0 : i64, scratch_operands = 0 : i64, tpu.core_type = #tpu.core_type<tc>, window_params = [{transform_indices = @transform_0, window_bounds = array<i64: 8, 256>}, {transform_indices = @transform_1, window_bounds = array<i64: 8, 256>}, {transform_indices = @transform_2, window_bounds = array<i64: 8, 256>}]} {
    %c0 = arith.constant 0 : index
    %c0_0 = arith.constant 0 : index
    %0 = vector.load %arg2[%c0, %c0_0] : memref<8x256xf32, #tpu.memory_space<vmem>>, vector<8x256xf32>
    %c0_1 = arith.constant 0 : index
    %c0_2 = arith.constant 0 : index
    %1 = vector.load %arg3[%c0_1, %c0_2] : memref<8x256xf32, #tpu.memory_space<vmem>>, vector<8x256xf32>
    %2 = arith.mulf %0, %1 : vector<8x256xf32>
    %c0_3 = arith.constant 0 : index
    %c0_4 = arith.constant 0 : index
    %3 = vector.load %arg4[%c0_3, %c0_4] : memref<8x256xf32, #tpu.memory_space<vmem>>, vector<8x256xf32>
    tpu.vector_store %arg4[%c0_3, %c0_4], %2 {strides = array<i32>} : memref<8x256xf32, #tpu.memory_space<vmem>>, vector<8x256xf32>,
    return
  }
  func.func @transform_0(%arg0: i32, %arg1: i32) -> (i32, i32) {
    %c0_i32 = arith.constant 0 : i32
    return %arg1, %arg0 : i32, i32
  }
  func.func @transform_1(%arg0: i32, %arg1: i32) -> (i32, i32) {
    %c0_i32 = arith.constant 0 : i32
    %c0_i32_0 = arith.constant 0 : i32
    return %c0_i32, %arg0 : i32, i32
  }
  func.func @transform_2(%arg0: i32, %arg1: i32) -> (i32, i32) {
    %c0_i32 = arith.constant 0 : i32
    return %arg1, %arg0 : i32, i32
  }
}

</mosaic_0001>

<bundles_post_ra>
// kernel: tpu_custom_call.1
= control target key start
LH: loop header
LB: loop body
LE: loop exit
PB: predicated region body
PF: predicated region fallthrough
CT: control target
= control target key end

     0   :  { %7 = vsyncpa [#allocation3], 0  ;;  %s189_s0 = inlined_call_operand.hbm [shape: f32[8,256], index: 0, kind: input, shape index: {}]   ;;  %s190_s1 = inlined_call_operand.hbm [shape: f32[8,256], index: 1, kind: input, shape index: {}]   ;;  %s191_s2 = inlined_call_operand.hbm [shape: f32[8,256], index: 2, kind: output, shape index: {}]  }
   0x1   :  { %8 = vsyncpa [#allocation6], 0 }
   0x2   :  { %9 = vsyncpa [#allocation4], 0  ;;  %s135_s9 = smov [#allocation2]   ;;  %s136_s11 = smov [#allocation5]  }
   0x3   :  { %s16_s10 = sshll.u32 %s135_s9, 4  ;;  %s26_s12 = sshll.u32 %s136_s11, 4  ;;  %s17_s10 = int_to_ptr.vmem [resolvable:$true] %s16_s10  ;;  %s27_s12 = int_to_ptr.vmem [resolvable:$true] %s26_s12 }
   0x4   :  { %s63_s15 = scalar_lea.hbm %s189_s0, 256 }
   0x5   :  { %p64_p0 = scmp.ne.s32.totalorder %s189_s0, %s63_s15  ;;  %p67_p1 = scmp.lt.u32.totalorder %s63_s15, %s189_s0 }
   0x7   :  { %p69_p2 = pnand %p67_p1, %p64_p0 }
   0x9   :  { %72 = shalt.err (!%p69_p2)
}
   0xa   :  { %s73_s20 = scalar_lea.vmem %s17_s10, 256  ;;  %p78_p4 = scmp.lt.s32.totalorder %s17_s10, %s17_s10 }
   0xb   :  { %p74_p3 = scmp.ne.s32.totalorder %s17_s10, %s73_s20  ;;  %p79_p5 = scmp.lt.s32.totalorder %s73_s20, %s73_s20 }
   0xd   :  { %p80_p6 = por %p79_p5, %p78_p4 }
   0xf   :  { %p81_p7 = pnand %p80_p6, %p74_p3 }
  0x11   :  { %84 = shalt.err (!%p81_p7)
}
  0x12   :  { %19 = dma.hbm_to_vmem [thread:$0]  %s189_s0, 256, %s17_s10, [#allocation3]  }
  0x13   :  { %s85_s25 = scalar_lea.hbm %s190_s1, 256 }
  0x14   :  { %p86_p8 = scmp.ne.s32.totalorder %s190_s1, %s85_s25  ;;  %p89_p9 = scmp.lt.u32.totalorder %s85_s25, %s190_s1 }
  0x16   :  { %p91_p10 = pnand %p89_p9, %p86_p8 }
  0x18   :  { %94 = shalt.err (!%p91_p10)
}
  0x19   :  { %s95_s30 = scalar_lea.vmem %s27_s12, 256  ;;  %p100_p12 = scmp.lt.s32.totalorder %s27_s12, %s27_s12 }
  0x1a   :  { %p96_p11 = scmp.ne.s32.totalorder %s27_s12, %s95_s30  ;;  %p101_p13 = scmp.lt.s32.totalorder %s95_s30, %s95_s30 }
  0x1c   :  { %p102_p0 = por %p101_p13, %p100_p12 }
  0x1e   :  { %p103_p1 = pnand %p102_p0, %p96_p11 }
  0x20   :  { %106 = shalt.err (!%p103_p1)
}
  0x21   :  { %29 = dma.hbm_to_vmem [thread:$0]  %s190_s1, 256, %s27_s12, [#allocation6]  }
  0x22   :  { %129 = dma.done.wait [#allocation3], 256  }
  0x23   :  { %130 = vsyncadd [#allocation3], 4294967040 }
  0x24   :  { %131 = dma.done.wait [#allocation6], 256  }
  0x25   :  { %132 = vsyncadd [#allocation6], 4294967040  ;;  %s137_s4 = smov [#allocation7]   ;;  %v36_v0 = vld [vmem:[#allocation2] sm:$0xff]  ;;  %v38_v1 = vld [vmem:[#allocation5] sm:$0xff] }
  0x26   :  { %s50_s5 = sshll.u32 %s137_s4, 4  ;;  %v37_v2 = vld [vmem:[#allocation2 + $0x8] sm:$0xff]  ;;  %v40_v3 = vmul.f32 %v38_v1, %v36_v0  ;;  %v39_v4 = vld [vmem:[#allocation5 + $0x8] sm:$0xff]  ;;  %s51_s5 = int_to_ptr.vmem [resolvable:$true] %s50_s5 }
  0x27   :  { %v41_v5 = vmul.f32 %v39_v4, %v37_v2  ;;  %s107_s6 = scalar_lea.vmem %s51_s5, 256  ;;  %p112_p3 = scmp.lt.s32.totalorder %s51_s5, %s51_s5 }
  0x28   :  { %42 = vst [vmem:[#allocation7] sm:$0xff] %v40_v3  ;;  %p108_p2 = scmp.ne.s32.totalorder %s51_s5, %s107_s6  ;;  %p113_p4 = scmp.lt.s32.totalorder %s107_s6, %s107_s6 }
  0x29   :  { %43 = vst [vmem:[#allocation7 + $0x8] sm:$0xff] %v41_v5 }
  0x2a   :  { %p114_p5 = por %p113_p4, %p112_p3 }
  0x2c   :  { %p115_p6 = pnand %p114_p5, %p108_p2 }
  0x2e   :  { %118 = shalt.err (!%p115_p6)
}
  0x2f   :  { %s119_s8 = scalar_lea.hbm %s191_s2, 256 }
  0x30   :  { %p120_p7 = scmp.ne.s32.totalorder %s191_s2, %s119_s8  ;;  %p123_p8 = scmp.lt.u32.totalorder %s119_s8, %s191_s2 }
  0x32   :  { %p125_p9 = pnand %p123_p8, %p120_p7 }
  0x34   :  { %128 = shalt.err (!%p125_p9)
}
  0x35   :  { %53 = dma.vmem_to_hbm [thread:$0]  %s51_s5, 256, %s191_s2, [#allocation4]  }
  0x36   :  { %133 = dma.done.wait [#allocation4], 256  }
  0x37   :  { %134 = vsyncadd [#allocation4], 4294967040 }
  0x38   :  { %57 = vsyncpa [#allocation3], 1 }
  0x39   :  { %58 = vsyncpa [#allocation6], 1 }
  0x3a   :  { %59 = vsyncpa [#allocation4], 1 }

</bundles_post_ra>
